<compile_context>
chip_gen: v5e
topology: v5e:2x2
jax: 0.10.0
libtpu: 0.0.40
codegen_flags: <defaults>
</compile_context>

<pallas_src>
import math

import jax
import jax.numpy as jnp
from jax import lax
from jax.experimental import pallas as pl
from jax.experimental.pallas import tpu as pltpu


def _cdiv(a, b):
    return (a + b - 1) // b


def _round_up(x, n):
    return _cdiv(x, n) * n


def _physical_vmem_bytes():
    """Per-core physical VMEM; falls back to the v7x worst case (64 MiB)."""
    try:
        info = pltpu.get_tpu_info()
        v = getattr(info, "vmem_capacity_bytes", None)
        if v:
            return int(v)
    except Exception:
        pass
    return 64 * 1024 * 1024


def _tile_vmem_bytes(rows, cols, dtype):
    """VMEM footprint of one (rows, cols) tile including sublane/lane padding."""
    itemsize = jnp.dtype(dtype).itemsize
    pack = max(1, 4 // itemsize)                 # rows packed per 32-bit sublane
    r = _round_up(max(int(rows), 1), 8 * pack)
    c = _round_up(max(int(cols), 1), 128)
    return r * c * itemsize


def _lora_kernel(x_ref, a_ref, b_ref, bias_ref, o_ref, h_ref):
    # x_ref:    (tm, in)       -- varies along M only
    # a_ref:    (rank, in)     -- grid-invariant (lora_A.weight, native layout)
    # b_ref:    (rank, tn)     -- varies along N only (lora_B.weight.T, pre-scaled)
    # bias_ref: (1, tn) f32    -- varies along N only (pre-scaled)
    # o_ref:    (tm, tn)
    # h_ref:    (tm, rank) f32 scratch; persists across the sequential N axis.
    @pl.when(pl.program_id(1) == 0)
    def _():
        # h = x @ A.T : contract the last dims so in_features stays on the lane axis.
        h_ref[...] = lax.dot_general(
            x_ref[...], a_ref[...],
            dimension_numbers=(((1,), (1,)), ((), ())),
            preferred_element_type=jnp.float32)

    y = jnp.dot(h_ref[...].astype(b_ref.dtype), b_ref[...],
                preferred_element_type=jnp.float32)
    o_ref[...] = (y + bias_ref[...]).astype(o_ref.dtype)


def lora_forward(x, a, b_t, bias, scaling, *, tm=512, tn=512,
                 compute_dtype=None, vmem_budget_bytes=None):
    """LoRA forward: ((x @ a.T) @ b_t + bias) * scaling.

    x:    (..., in_features)
    a:    (rank, in_features)   -- lora_A.weight in its native nn.Linear layout
    b_t:  (rank, out_features)  -- lora_B.weight transposed
    bias: (out_features,) or None
    compute_dtype: optional narrower MXU dtype for x / a / b_t (bf16 recommended on
      v5e / v6e / v7x; fp8 opt-in on v7x).  Accumulation stays f32; output keeps x.dtype.
    """
    in_features = x.shape[-1]
    rank, in_a = a.shape
    assert in_a == in_features
    out_features = b_t.shape[1]
    assert b_t.shape[0] == rank

    lead = x.shape[:-1]
    m = math.prod(lead) if lead else 1
    out_dtype = x.dtype

    if bias is None:
        bias = jnp.zeros((out_features,), jnp.float32)

    # Fold `scaling` into the tiny B / bias arrays (one-time host-side ops).
    s = float(scaling)
    b_t = b_t.astype(jnp.float32) * s
    bias2 = (bias.astype(jnp.float32) * s).reshape(1, out_features)

    x2 = x.reshape(m, in_features)               # metadata-only reshape (contiguous)
    if compute_dtype is not None:
        x2 = x2.astype(compute_dtype)
        a = a.astype(compute_dtype)
        b_t = b_t.astype(compute_dtype)

    cdt = x2.dtype
    itemsize = jnp.dtype(cdt).itemsize
    align = 8 * max(1, 4 // itemsize)            # sublane packing: 8 f32 / 16 bf16 / 32 fp8

    # ---- N tiling: lane-dense (multiple of 128) tiles, no host padding; the last
    # tile may be partial (Pallas masks its writeback). ----
    if out_features <= tn:
        tn_eff = out_features                    # full-dim block: always legal
    else:
        tn_eff = max(128, (tn // 128) * 128)

    # ---- M tiling: balanced, sublane-aligned, >= 2 M tiles when m allows (only the
    # M axis is parallel once N is sequential -> keeps both v7x TensorCores busy). ----
    want_tiles = max(_cdiv(m, tm), 2 if m >= 2 * align else 1)
    tm_eff = _round_up(_cdiv(m, want_tiles), align)
    if tm_eff >= m:
        tm_eff = m                               # full-dim block: always legal

    # ---- VMEM-aware shrink (padding-aware estimate, per-chip budget). ----
    phys_vmem = _physical_vmem_bytes()
    budget = vmem_budget_bytes if vmem_budget_bytes is not None else phys_vmem // 2

    def vmem_est(tm_, tn_):
        return (2 * _tile_vmem_bytes(tm_, in_features, cdt)        # x tile (2 bufs)
                + 2 * _tile_vmem_bytes(rank, in_features, cdt)     # A (grid-invariant)
                + 2 * _tile_vmem_bytes(rank, tn_, cdt)             # B tile
                + 2 * _tile_vmem_bytes(1, tn_, jnp.float32)        # bias tile
                + 2 * _tile_vmem_bytes(tm_, tn_, out_dtype)        # out tile
                + _tile_vmem_bytes(tm_, rank, jnp.float32)         # h scratch
                + _tile_vmem_bytes(tm_, tn_, jnp.float32))         # f32 y intermediate

    while tm_eff > align and vmem_est(tm_eff, tn_eff) > budget:
        new_tm = _round_up(max(align, tm_eff // 2), align)
        if new_tm >= tm_eff:
            break
        tm_eff = new_tm
    while tn_eff > 128 and vmem_est(tm_eff, tn_eff) > budget:
        new_tn = max(128, _round_up(tn_eff // 2, 128))
        if new_tn >= tn_eff:
            break
        tn_eff = new_tn

    grid = (_cdiv(m, tm_eff), _cdiv(out_features, tn_eff))

    # Advisory cost estimate (HBM-bandwidth bound for small rank).
    flops = 2 * m * in_features * rank + 2 * m * rank * out_features
    bytes_accessed = (m * in_features * itemsize
                      + m * out_features * jnp.dtype(out_dtype).itemsize
                      + in_features * rank * itemsize
                      + rank * out_features * itemsize
                      + out_features * 4)
    cost = pl.CostEstimate(flops=int(flops), transcendentals=0,
                           bytes_accessed=int(bytes_accessed))

    est = vmem_est(tm_eff, tn_eff)
    vmem_limit = max(2 * est, 32 * 1024 * 1024)
    vmem_limit = min(vmem_limit, int(0.85 * phys_vmem))
    vmem_limit = int(max(vmem_limit, est + 2 * 1024 * 1024))

    out2 = pl.pallas_call(
        _lora_kernel,
        out_shape=jax.ShapeDtypeStruct((m, out_features), out_dtype),
        grid_spec=pltpu.PrefetchScalarGridSpec(
            num_scalar_prefetch=0,
            grid=grid,
            in_specs=[
                pl.BlockSpec((tm_eff, in_features), lambda i, j: (i, 0)),
                # A / B / bias blocks are constant along the M axis (A along N too),
                # so Pallas revisits them without re-DMA.
                pl.BlockSpec((rank, in_features), lambda i, j: (0, 0)),
                pl.BlockSpec((rank, tn_eff), lambda i, j: (0, j)),
                pl.BlockSpec((1, tn_eff), lambda i, j: (0, j)),
            ],
            out_specs=pl.BlockSpec((tm_eff, tn_eff), lambda i, j: (i, j)),
            scratch_shapes=[pltpu.VMEM((tm_eff, rank), jnp.float32)],
        ),
        compiler_params=pltpu.CompilerParams(
            # M parallel (megacore); N sequential so the h scratch is valid across
            # all N tiles of one M tile.
            dimension_semantics=("parallel", "arbitrary"),
            vmem_limit_bytes=vmem_limit,
        ),
        cost_estimate=cost,
    )(x2, a, b_t, bias2)

    return out2.reshape(*lead, out_features)


def init_lora_params(key, in_features, out_features, rank, bias=True):
    """Deterministic synthetic init mimicking nn.Linear's kaiming-uniform bounds.

    Returns:
      a:    (rank, in_features)   -- lora_A.weight (native layout)
      b_t:  (rank, out_features)  -- lora_B.weight transposed
      bias: (out_features,)
    """
    k_a, k_b, k_bias = jax.random.split(key, 3)
    bound_a = 1.0 / math.sqrt(in_features)
    bound_b = 1.0 / math.sqrt(rank)
    a = jax.random.uniform(k_a, (rank, in_features), jnp.float32,
                           minval=-bound_a, maxval=bound_a)
    b_t = jax.random.uniform(k_b, (rank, out_features), jnp.float32,
                             minval=-bound_b, maxval=bound_b)
    if bias:
        b_vec = jax.random.uniform(k_bias, (out_features,), jnp.float32,
                                   minval=-bound_b, maxval=bound_b)
    else:
        b_vec = jnp.zeros((out_features,), jnp.float32)
    return a, b_t, b_vec


if __name__ == "__main__":
    # Small LoRA config (matches the module: Linear(in->rank), Linear(rank->out, bias)).
    batch, seq = 2, 8
    in_features, out_features, rank = 32, 48, 8
    alpha = 16
    use_bias = True
    scaling = 1.0 if alpha is None else alpha / math.sqrt(rank)

    key = jax.random.PRNGKey(0)
    k_x, k_p = jax.random.split(key)
    x = jax.random.normal(k_x, (batch, seq, in_features), jnp.float32)
    a, b_t, bias = init_lora_params(k_p, in_features, out_features, rank, use_bias)

    # Reference (plain JAX, same math as the PyTorch module).
    ref = (x @ a.T @ b_t + bias) * scaling

    # f32 path.
    out = jax.block_until_ready(lora_forward(x, a, b_t, bias, scaling))
    assert out.shape == (batch, seq, out_features)
    assert jnp.allclose(out, ref, atol=1e-4, rtol=1e-4), "f32 mismatch vs reference"

    # Ragged M path: batch*seq not a multiple of the tile -> partial final M block,
    # handled by Pallas masking (no host-side pad / slice).
    x_r = jax.random.normal(k_x, (3, 7, in_features), jnp.float32)
    ref_r = (x_r @ a.T @ b_t + bias) * scaling
    out_r = jax.block_until_ready(lora_forward(x_r, a, b_t, bias, scaling))
    assert out_r.shape == (3, 7, out_features)
    assert jnp.allclose(out_r, ref_r, atol=1e-4, rtol=1e-4), "ragged-M mismatch"

    # bf16 compute path (recommended on v5e / v6e / v7x); loose tolerance for bf16 rounding.
    out_bf = jax.block_until_ready(
        lora_forward(x, a, b_t, bias, scaling, compute_dtype=jnp.bfloat16))
    assert out_bf.shape == (batch, seq, out_features)
    assert jnp.allclose(out_bf.astype(jnp.float32), ref, atol=0.15, rtol=0.15), \
        "bf16 mismatch vs reference"

    print("KERNEL_OK")
</pallas_src>

<mosaic_0001>
module attributes {stable_mosaic.version = 11 : i64} {
  func.func @_lora_kernel(%arg0: i32, %arg1: i32, %arg2: memref<8x32xf32, #tpu.memory_space<vmem>>, %arg3: memref<8x32xf32, #tpu.memory_space<vmem>>, %arg4: memref<8x48xf32, #tpu.memory_space<vmem>>, %arg5: memref<1x48xf32, #tpu.memory_space<vmem>>, %arg6: memref<8x48xf32, #tpu.memory_space<vmem>>, %arg7: memref<8x8xf32, #tpu.memory_space<vmem>>) attributes {dimension_semantics = [#tpu.dimension_semantics<parallel>, #tpu.dimension_semantics<arbitrary>], iteration_bounds = array<i64: 2, 1>, scalar_prefetch = 0 : i64, scratch_operands = 1 : i64, tpu.core_type = #tpu.core_type<tc>, window_params = [{transform_indices = @transform_0, window_bounds = array<i64: 8, 32>}, {pipeline_mode = #tpu.pipeline_mode<synchronous>, transform_indices = @transform_1, window_bounds = array<i64: 8, 32>}, {transform_indices = @transform_2, window_bounds = array<i64: 8, 48>}, {transform_indices = @transform_3, window_bounds = array<i64: 1, 48>}, {transform_indices = @transform_4, window_bounds = array<i64: 8, 48>}]} {
    %c0_i32 = arith.constant 0 : i32
    %0 = arith.cmpi eq, %arg1, %c0_i32 : i32
    %1 = arith.extui %0 : i1 to i32
    %c0_i32_0 = arith.constant 0 : i32
    %2 = arith.cmpi ne, %1, %c0_i32_0 : i32
    scf.if %2 {
      %c0_8 = arith.constant 0 : index
      %c0_9 = arith.constant 0 : index
      %10 = vector.load %arg2[%c0_8, %c0_9] : memref<8x32xf32, #tpu.memory_space<vmem>>, vector<8x32xf32>
      %c0_10 = arith.constant 0 : index
      %c0_11 = arith.constant 0 : index
      %11 = vector.load %arg3[%c0_10, %c0_11] : memref<8x32xf32, #tpu.memory_space<vmem>>, vector<8x32xf32>
      %cst_12 = arith.constant dense<0.000000e+00> : vector<8x8xf32>
      %12 = tpu.matmul %10, %11, %cst_12 {dimension_numbers = #tpu.dot_dimension_numbers<[1], [1], [0], [0], [0, 0, 1, 0], [], []>} : vector<8x32xf32>, vector<8x32xf32>, vector<8x8xf32> -> vector<8x8xf32>
      %c0_13 = arith.constant 0 : index
      %c0_14 = arith.constant 0 : index
      %13 = vector.load %arg7[%c0_13, %c0_14] : memref<8x8xf32, #tpu.memory_space<vmem>>, vector<8x8xf32>
      tpu.vector_store %arg7[%c0_13, %c0_14], %12 {strides = array<i32>} : memref<8x8xf32, #tpu.memory_space<vmem>>, vector<8x8xf32>,
    } else {
    }
    %c0 = arith.constant 0 : index
    %c0_1 = arith.constant 0 : index
    %3 = vector.load %arg7[%c0, %c0_1] : memref<8x8xf32, #tpu.memory_space<vmem>>, vector<8x8xf32>
    %c0_2 = arith.constant 0 : index
    %c0_3 = arith.constant 0 : index
    %4 = vector.load %arg4[%c0_2, %c0_3] : memref<8x48xf32, #tpu.memory_space<vmem>>, vector<8x48xf32>
    %cst = arith.constant dense<0.000000e+00> : vector<8x48xf32>
    %5 = tpu.matmul %3, %4, %cst {dimension_numbers = #tpu.dot_dimension_numbers<[1], [0], [0], [1], [0, 0, 1, 1], [], []>} : vector<8x8xf32>, vector<8x48xf32>, vector<8x48xf32> -> vector<8x48xf32>
    %c0_4 = arith.constant 0 : index
    %c0_5 = arith.constant 0 : index
    %6 = vector.load %arg5[%c0_4, %c0_5] : memref<1x48xf32, #tpu.memory_space<vmem>>, vector<1x48xf32>
    %7 = vector.broadcast %6 : vector<1x48xf32> to vector<8x48xf32>
    %8 = arith.addf %5, %7 : vector<8x48xf32>
    %c0_6 = arith.constant 0 : index
    %c0_7 = arith.constant 0 : index
    %9 = vector.load %arg6[%c0_6, %c0_7] : memref<8x48xf32, #tpu.memory_space<vmem>>, vector<8x48xf32>
    tpu.vector_store %arg6[%c0_6, %c0_7], %8 {strides = array<i32>} : memref<8x48xf32, #tpu.memory_space<vmem>>, vector<8x48xf32>,
    return
  }
  func.func @transform_0(%arg0: i32, %arg1: i32) -> (i32, i32) {
    %c0_i32 = arith.constant 0 : i32
    %c0_i32_0 = arith.constant 0 : i32
    return %arg0, %c0_i32 : i32, i32
  }
  func.func @transform_1(%arg0: i32, %arg1: i32) -> (i32, i32) {
    %c0_i32 = arith.constant 0 : i32
    %c0_i32_0 = arith.constant 0 : i32
    %c0_i32_1 = arith.constant 0 : i32
    return %c0_i32, %c0_i32_0 : i32, i32
  }
  func.func @transform_2(%arg0: i32, %arg1: i32) -> (i32, i32) {
    %c0_i32 = arith.constant 0 : i32
    %c0_i32_0 = arith.constant 0 : i32
    return %c0_i32, %arg1 : i32, i32
  }
  func.func @transform_3(%arg0: i32, %arg1: i32) -> (i32, i32) {
    %c0_i32 = arith.constant 0 : i32
    %c0_i32_0 = arith.constant 0 : i32
    return %c0_i32, %arg1 : i32, i32
  }
  func.func @transform_4(%arg0: i32, %arg1: i32) -> (i32, i32) {
    %c0_i32 = arith.constant 0 : i32
    return %arg0, %arg1 : i32, i32
  }
}

</mosaic_0001>

<bundles_post_ra>
// kernel: tpu_custom_call.1
= control target key start
LH: loop header
LB: loop body
LE: loop exit
PB: predicated region body
PF: predicated region fallthrough
CT: control target
= control target key end

     0   :  { %9 = vsyncpa [#allocation4], 0  ;;  %s930_s0 = inlined_call_operand.hbm [shape: f32[16,32], index: 0, kind: input, shape index: {}]   ;;  %s931_s1 = inlined_call_operand.hbm [shape: f32[8,32], index: 1, kind: input, shape index: {}]   ;;  %s932_s2 = inlined_call_operand.hbm [shape: f32[8,48], index: 2, kind: input, shape index: {}]   ;;  %s933_s3 = inlined_call_operand.vmem [shape: f32[1,48], index: 3, kind: input, shape index: {}]   ;;  %s934_s4 = inlined_call_operand.hbm [shape: f32[16,48], index: 4, kind: output, shape index: {}]  }
   0x1   :  { %11 = vsyncpa [#allocation4 + $0x1], 0 }
   0x2   :  { %12 = vsyncpa [#allocation7], 0 }
   0x3   :  { %13 = vsyncpa [#allocation5], 0 }
   0x4   :  { %15 = vsyncpa [#allocation5 + $0x1], 0  ;;  %s785_s15 = smov 0   ;;  %s787_s16 = smov 0  }
   0x5   :  { %s789_s17 = smov 0   ;;  %s791_s18 = smov 0  }
   0x6   :  { %s793_s19 = smov 0   ;;  %s795_s20 = smov 0  }
   0x7 LB: > { %s475_s21 = sadd.s32 4294967295, %s756_s20   ;;  %s476_s22 = sadd.s32 4294967294, %s756_s20   ;;  %s756_s20 = sphi %s795_s20, %s21_s20   ;;  %s752_s19 = sphi %s793_s19, %s944_s19   ;;  %s748_s18 = sphi %s791_s18, %s943_s18   ;;  %s744_s17 = sphi %s789_s17, %s942_s17   ;;  %s740_s16 = sphi %s787_s16, %s941_s16   ;;  %s736_s15 = sphi %s785_s15, %s940_s15  }
   0x8   : > { %p53_p0 = scmp.ne.s32.totalorder %s740_s16, %s736_s15  ;;  %p819_p1 = scmp.eq.s32.totalorder %s475_s21, 0 }
   0x9   : > { %p158_p2 = scmp.eq.s32.totalorder %s476_s22, 1  ;;  %p477_p4 = scmp.ge.s32.totalorder %s756_s20, 1 }
   0xa   : > { %p825_p3 = por %p819_p1, %p53_p0  ;;  %p165_p6 = scmp.lt.s32.totalorder %s756_s20, 3 }
   0xb   : > { %p830_p5 = por %p158_p2, %p53_p0  ;;  %s177_s28 = sshll.u32 %s931_s1, 4  ;;  %s178_s28 = int_to_ptr.hbm [resolvable:$true] %s177_s28 }
   0xc   : > { %p838_p7 = pnand %p477_p4, %p165_p6  ;;  %p481_p8 = scmp.ge.s32.totalorder %s756_s20, 2 }
   0xd   : > { %s758_s30 = smov [#allocation6]   ;;  %s191_s8 = sshll.u32 %s932_s2, 4  ;;  %s192_s8 = int_to_ptr.hbm [resolvable:$true] %s191_s8 }
   0xe   : > { %p508_p9 = pneg %p838_p7  ;;  %s179_s5 = sshll.u32 %s758_s30, 4  ;;  %s180_s5 = int_to_ptr.vmem [resolvable:$true] %s179_s5 }
   0xf   : > { %s759_s9 = smov [#allocation8]   ;;  %p152_p11 = scmp.eq.s32.totalorder %s475_s21, 1 }
  0x10   : > { %p509_p10 = pnand %p508_p9, %p819_p1  ;;  %s193_s10 = sshll.u32 %s759_s9, 4  ;;  %s194_s10 = int_to_ptr.vmem [resolvable:$true] %s193_s10 }
  0x11   : > { %s33_s11 = sadd.s32 1, %s752_s19  ;;  %s40_s12 = sadd.s32 1, %s744_s17 }
  0x12   : > { %511 = dma.hbm_to_vmem [thread:$0]  (!%p509_p10), %s178_s28, 128, %s180_s5, [#allocation7]  }
  0x13   : > { %514 = dma.hbm_to_vmem [thread:$0]  (!%p509_p10), %s192_s8, 128, %s194_s10, [#allocation7]  }
  0x14   : > { %p35_p12 = scmp.ge.s32.totalorder %s33_s11, 2  ;;  %p47_p13 = scmp.ne.s32.totalorder %s744_s17, %s740_s16 }
  0x15   : > { %p48_p0 = scmp.eq.s32.totalorder %s756_s20, 0  ;;  %p525_p4 = scmp.lt.s32.totalorder %s756_s20, 2 }
  0x16   : > { %s946_s11 = smov (%p35_p12, %s33_s11), 0  ;;  %p857_p2 = por %p152_p11, %p47_p13 }
  0x17   : > { %s37_s14 = ssub.s32 %s752_s19, %s946_s11  ;;  %s210_s22 = sand.u32 1, %s744_s17  }
  0x18   : > { %p38_p6 = scmp.eq.s32.totalorder %s37_s14, 0  ;;  %p49_p9 = por %p48_p0, %p47_p13 }
  0x19   : > { %s482_s26 = sshll.u32 %s210_s22, 3  ;;  %s483_s21 = sshll.u32 %s752_s19, 3 }
  0x1a   : > { %s867_s27 = scalar_select %p38_p6, %s744_s17, %s40_s12  }
  0x1b   : > { %s218_s5 = scalar_lea.hbm %s930_s0, %s483_s21  ;;  %s214_s7 = scalar_lea.vmem [#allocation3], %s482_s26 }
  0x1c   : > { %s220_s6 = sshll.u32 %s218_s5, 4  ;;  %s222_s8 = sshll.u32 %s214_s7, 4  ;;  %s221_s6 = int_to_ptr.hbm [resolvable:$true] %s220_s6  ;;  %s223_s8 = int_to_ptr.vmem [resolvable:$true] %s222_s8 }
  0x1d   : > { %p516_p10 = pnand %p525_p4, %p49_p9  ;;  %s211_s9 = scalar_lea.sflag [#allocation4], %s210_s22 }
  0x1e   : > { %231 = sbr.rel (%p838_p7) target bundleno = 307 (0x133), region = 36  ;;  %s877_s10 = sand.u32 (!%p838_p7), 1, %s740_s16  }
  0x1f   : > { %518 = dma.hbm_to_vmem [thread:$0]  (!%p516_p10), %s221_s6, 128, %s223_s8, %s211_s9  }
  0x20   : > { %s485_s12 = sshll.u32 (!%p838_p7), %s877_s10, 3  ;;  %s234_s14 = scalar_lea.sflag (!%p838_p7), [#allocation4], %s877_s10 }
  0x21   : > { %s237_s21 = scalar_lea.vmem (!%p838_p7), [#allocation3], %s485_s12 }
  0x23   : > { %723 = dma.done.wait (%p825_p3), %s234_s14, 128  }
  0x24   : > { %725 = vsyncadd (%p825_p3), %s234_s14, 4294967168 }
  0x25   : > { %727 = dma.done.wait (%p819_p1), [#allocation7], 256  }
  0x26   : > { %729 = vsyncadd (%p819_p1), [#allocation7], 4294967040  ;;  %vm285_vm0 = vcmask 261120   ;;  %v284_v0 = vld [vmem:[#allocation6] sm:$0xff]  ;;  %v283_v1 = vld [vmem:[%s237_s21] sm:$0xff]  ;;  %vm312_vm1 = vcmask 64512  }
  0x27   : > { %489 = vmatpush.xpose.msk.msra.mxu0 %vm285_vm0, %v284_v0  ;;  %v315_v2 = vld [vmem:[#allocation8] sm:$0xff]  ;;  %s493_s24 = sshll.u32 %s748_s18, 3  ;;  %s275_s30 = scalar_lea.vmem [#allocation9], %s485_s12  ;;  %vm344_vm2 = vcmask 392192  }
  0x28   : > { %339 = vmatpush.msra.mxu1 %v315_v2  ;;  %s358_s23 = scalar_lea.hbm %s934_s4, %s493_s24  ;;  %v579_v5 = vld [vmem:[%s933_s3] ss:$0 sm:$0xff]  ;;  %s360_s5 = sshll.u32 %s275_s30, 4  ;;  %s361_s5 = int_to_ptr.vmem [resolvable:$true] %s360_s5 }
  0x29   : > { %s362_s6 = sshll.u32 %s358_s23, 4  ;;  %s347_s7 = scalar_lea.sflag [#allocation5], %s877_s10  ;;  %s363_s6 = int_to_ptr.hbm [resolvable:$true] %s362_s6 }
  0x2a   : > { %490 = vmatmul.msk.f32.vlgmr.msra.gmra.mxu0 %vm285_vm0, %v283_v1  ;;  %s684_s18 = sshra.s32 %s363_s6, 4  ;;  %s690_s12 = scalar_lea.hbm %s934_s4, 16  ;;  %s685_s18 = int_to_ptr.hbm [resolvable:$true] %s684_s18 }
  0x2b   : > { %s686_s8 = scalar_lea.hbm %s685_s18, 8  ;;  %p691_p11 = scmp.lt.s32.totalorder %s685_s18, %s934_s4 }
  0x2c   : > { %p687_p1 = scmp.ne.s32.totalorder %s685_s18, %s686_s8  ;;  %p692_p12 = scmp.lt.s32.totalorder %s690_s12, %s686_s8 }
  0x2e   : > { %p688_p3 = pnand %p687_p1, %p857_p2  ;;  %p693_p13 = por %p692_p12, %p691_p11 }
  0x30   : > { %p689_p7 = pneg %p688_p3 }
  0x32   : > { %p694_p0 = pnand %p693_p13, %p689_p7 }
  0xa7   : > { %v309_v3 = vpop.f32.mrf.mxu0 }
  0xa8   : > { %313 = vst.msk [vmem:[#allocation2] sm:$0xff] %vm312_vm1, %v309_v3 }
  0xaf   : > { %v314_v4 = vld [vmem:[#allocation2] sm:$0xff] }
  0xb0   : > { %491 = vmatmul.msk.f32.vlgmr.msra.gmra.mxu1 %vm312_vm1, %v314_v4 }
 0x12d   : > { %v341_v6 = vpop.f32.mrf.mxu1 }
 0x12e   : > { %v342_v7 = vadd.f32 %v579_v5, %v341_v6 }
 0x130   : > { %345 = vst.msk [vmem:[%s275_s30] sm:$0xff] %vm344_vm2, %v342_v7 }
 0x131   : > { %697 = shalt.err (!%p694_p0)
}
 0x132   : > { %506 = dma.vmem_to_hbm [thread:$0]  (%p857_p2), %s361_s5, 128, %s363_s6, %s347_s7  }
 0x133 PF: > { %s374_s10 = sand.u32 1, %s736_s15   ;;  %p520_p4 = pnand %p481_p8, %p830_p5 }
 0x134   : > { %s375_s29 = scalar_lea.sflag [#allocation5], %s374_s10 }
 0x135   : > { %p521_p6 = pneg %p520_p4 }
 0x137   : > { %731 = dma.done.wait (%p521_p6), %s375_s29, 128  }
 0x138   : > { %733 = vsyncadd (%p521_p6), %s375_s29, 4294967168  ;;  %s21_s20 = sadd.s32 1, %s756_s20   ;;  %s940_s15 = smov %s740_s16 }
 0x139   : > { %p18_p9 = scmp.ge.s32.totalorder %s21_s20, 4   ;;  %s941_s16 = smov %s744_s17 }
 0x13a   : > { %s942_s17 = smov %s867_s27  ;;  %s943_s18 = smov %s752_s19 }
 0x13b   : > { %s944_s19 = smov %s946_s11  ;;  %20 = sbr.rel (!%p18_p9) target bundleno = 7 (0x7), region = 97 }
 0x140   :  { %381 = vsyncpa [#allocation4], 1 }
 0x141   :  { %383 = vsyncpa [#allocation4 + $0x1], 1 }
 0x142   :  { %384 = vsyncpa [#allocation7], 1 }
 0x143   :  { %385 = vsyncpa [#allocation5], 1 }
 0x144   :  { %387 = vsyncpa [#allocation5 + $0x1], 1 }

</bundles_post_ra>
